<compile_context>
chip_gen: v6e
topology: v6e:2x2x1
jax: 0.10.0
libtpu: 0.0.40
codegen_flags: <defaults>
</compile_context>

<pallas_src>
import functools

import jax
import jax.numpy as jnp
from jax.experimental import pallas as pl
from jax.experimental.pallas import tpu as pltpu


def _round_up(x, m):
    return ((x + m - 1) // m) * m


# --------------------------------------------------------------------------- #
# Kernel
# --------------------------------------------------------------------------- #
def fc_kernel(x_ref, w_ref, b_ref, o_ref, acc_ref):
    """One (TM, TN) output tile; accumulates over the k (reduction/D) grid axis.

    x_ref:   [TM, TK]  activations tile (compute dtype, e.g. bf16)
    w_ref:   [TK, TN]  weight tile, pre-transposed [D, C] layout (MXU-native)
    b_ref:   [1,  TN]  bias tile (f32, lane-dense)
    o_ref:   [TM, TN]  output tile
    acc_ref: [TM, TN]  f32 accumulator scratch (persists across k iterations)
    """
    k = pl.program_id(2)

    @pl.when(k == 0)
    def _():
        acc_ref[...] = jnp.zeros_like(acc_ref)

    # Canonical [M,K] x [K,N] contraction -> feeds the MXU directly.
    acc_ref[...] += jnp.dot(
        x_ref[...], w_ref[...], preferred_element_type=jnp.float32
    )

    @pl.when(k == pl.num_programs(2) - 1)
    def _():
        # f32 epilogue (bias add); cast only at the final store.
        o_ref[...] = (acc_ref[...] + b_ref[...]).astype(o_ref.dtype)


# --------------------------------------------------------------------------- #
# One-time weight preparation (mirrors load_snapshot semantics)
# --------------------------------------------------------------------------- #
def prepare_fc_params(w, b, *, unbiased=True, param_dtype=jnp.bfloat16,
                      tn=512, tk=1024):
    """One-time (load-snapshot-time) parameter preparation.

    w: [C, D] (nn.Linear convention), b: [C].
    Returns (wt_padded [Dp, Cp] in param_dtype, bias_padded [1, Cp] f32,
             num_classes C, tn, tk) where tn/tk are the (possibly clamped)
    tile sizes the padding was sized for.
    """
    C, D = w.shape
    assert b.shape == (C,), "bias shape mismatch"

    w32 = w.astype(jnp.float32)
    if unbiased:
        # Row-mean centering over the FULL (unpadded) feature axis, once.
        w32 = w32 - jnp.mean(w32, axis=1, keepdims=True)

    # Clamp tiles for small problems; keep lane axis multiples of 128.
    tn = min(tn, _round_up(C, 128))
    tk = min(tk, _round_up(D, 128))
    Cp = _round_up(C, tn)
    Dp = _round_up(D, tk)

    wt = w32.T.astype(param_dtype)                       # [D, C], MXU-native layout
    if (Dp, Cp) != (D, C):
        wt = jnp.pad(wt, ((0, Dp - D), (0, Cp - C)))     # zeros: contribute 0

    bias = b.astype(jnp.float32).reshape(1, C)
    if Cp != C:
        bias = jnp.pad(bias, ((0, 0), (0, Cp - C)))

    return jax.device_put(wt), jax.device_put(bias), C, tn, tk


# --------------------------------------------------------------------------- #
# Forward (hot path): y = x @ w_prepared + b
# --------------------------------------------------------------------------- #
@functools.partial(
    jax.jit, static_argnames=("num_classes", "tm", "tn", "tk", "out_dtype")
)
def feature_classifier_forward(x, wt_p, b_p, *, num_classes,
                               tm=256, tn=512, tk=1024, out_dtype=jnp.float32):
    """x: [N, D]; wt_p: [Dp, Cp] (prepared); b_p: [1, Cp]  ->  [N, num_classes]."""
    N, D = x.shape
    Dp, Cp = wt_p.shape
    C = num_classes
    assert Dp % tk == 0 and Cp % tn == 0, "tiles must match prepare_fc_params"
    assert Dp >= D and Cp >= C

    compute_dtype = wt_p.dtype
    # bf16 packs two rows per sublane -> 16-row granularity; f32 -> 8.
    row_gran = 16 if compute_dtype == jnp.bfloat16 else 8
    tm_eff = min(tm, _round_up(N, row_gran))
    Np = _round_up(N, tm_eff)

    # Single pre-kernel pass: cast (if needed) + pad (only if needed).
    xk = x.astype(compute_dtype)
    if (Np, Dp) != (N, D):
        xk = jnp.pad(xk, ((0, Np - N), (0, Dp - D)))

    grid = (Np // tm_eff, Cp // tn, Dp // tk)

    x_bytes = jnp.dtype(compute_dtype).itemsize
    w_bytes = jnp.dtype(wt_p.dtype).itemsize
    o_bytes = jnp.dtype(out_dtype).itemsize

    out = pl.pallas_call(
        fc_kernel,
        out_shape=jax.ShapeDtypeStruct((Np, Cp), out_dtype),
        grid_spec=pltpu.PrefetchScalarGridSpec(
            num_scalar_prefetch=0,
            grid=grid,
            in_specs=[
                pl.BlockSpec((tm_eff, tk), lambda i, j, k: (i, k)),   # x  [TM, TK]
                pl.BlockSpec((tk, tn), lambda i, j, k: (k, j)),       # wT [TK, TN]
                pl.BlockSpec((1, tn), lambda i, j, k: (0, j)),        # b  [1,  TN]
            ],
            out_specs=pl.BlockSpec((tm_eff, tn), lambda i, j, k: (i, j)),
            scratch_shapes=[pltpu.VMEM((tm_eff, tn), jnp.float32)],
        ),
        compiler_params=pltpu.CompilerParams(
            # N / C tiles independent -> shard across TCs on v7x; reduction (D)
            # axis stays last and "arbitrary" (accumulator carried across it).
            dimension_semantics=("parallel", "parallel", "arbitrary"),
        ),
        cost_estimate=pl.CostEstimate(
            flops=2 * Np * Cp * Dp,
            transcendentals=0,
            bytes_accessed=(Np * Dp * x_bytes
                            + Dp * Cp * w_bytes
                            + Np * Cp * o_bytes
                            + Cp * 4),
        ),
    )(xk, wt_p, b_p)

    if (Np, Cp) != (N, C):
        out = out[:N, :C]
    return out


# --------------------------------------------------------------------------- #
# Reference + self-test
# --------------------------------------------------------------------------- #
def _reference(x, w, b, *, unbiased=True, compute_dtype=jnp.float32):
    w32 = w.astype(jnp.float32)
    if unbiased:
        w32 = w32 - jnp.mean(w32, axis=1, keepdims=True)
    y = jnp.dot(
        x.astype(compute_dtype),
        w32.T.astype(compute_dtype),
        preferred_element_type=jnp.float32,
    )
    return y + b[None, :].astype(jnp.float32)


if __name__ == "__main__":
    # Small, deterministic shapes: batch=8 feature vectors of hidden=32,
    # classified into 16 classes.
    N, D, C = 8, 32, 16
    key = jax.random.PRNGKey(0)
    kx, kw, kb = jax.random.split(key, 3)

    x = jax.random.normal(kx, (N, D), dtype=jnp.float32)
    w = jax.random.normal(kw, (C, D), dtype=jnp.float32) * 0.1   # fc.weight [C, D]
    b = jax.random.normal(kb, (C,), dtype=jnp.float32) * 0.1     # fc.bias   [C]

    cases = [
        (True, jnp.bfloat16, 2e-2),   # load_snapshot(unbiased=True), bf16 weights
        (False, jnp.bfloat16, 2e-2),  # plain FC, bf16 weights
        (True, jnp.float32, 1e-5),    # centered, full-precision path
        (False, jnp.float32, 1e-5),   # plain FC, full-precision path
    ]
    for unbiased, pdtype, tol in cases:
        # One-time weight prep (mirrors load_snapshot): center, transpose, cast, pad.
        wt_p, b_p, num_classes, tn, tk = prepare_fc_params(
            w, b, unbiased=unbiased, param_dtype=pdtype
        )
        out = feature_classifier_forward(
            x, wt_p, b_p, num_classes=num_classes, tn=tn, tk=tk
        )
        out = jax.block_until_ready(out)
        ref = jax.block_until_ready(
            _reference(x, w, b, unbiased=unbiased, compute_dtype=pdtype)
        )
        assert out.shape == (N, C)
        assert jnp.allclose(out, ref, atol=tol, rtol=tol), (unbiased, pdtype)

    print("KERNEL_OK")
</pallas_src>

<mosaic_0001>
module attributes {stable_mosaic.version = 11 : i64} {
  func.func @fc_kernel(%arg0: i32, %arg1: i32, %arg2: i32, %arg3: memref<16x128xbf16, #tpu.memory_space<vmem>>, %arg4: memref<128x128xbf16, #tpu.memory_space<vmem>>, %arg5: memref<1x128xf32, #tpu.memory_space<vmem>>, %arg6: memref<16x128xf32, #tpu.memory_space<vmem>>, %arg7: memref<16x128xf32, #tpu.memory_space<vmem>>) attributes {dimension_semantics = [#tpu.dimension_semantics<parallel>, #tpu.dimension_semantics<parallel>, #tpu.dimension_semantics<arbitrary>], iteration_bounds = array<i64: 1, 1, 1>, scalar_prefetch = 0 : i64, scratch_operands = 1 : i64, tpu.core_type = #tpu.core_type<tc>, window_params = [{transform_indices = @transform_0, window_bounds = array<i64: 16, 128>}, {transform_indices = @transform_1, window_bounds = array<i64: 128, 128>}, {transform_indices = @transform_2, window_bounds = array<i64: 1, 128>}, {transform_indices = @transform_3, window_bounds = array<i64: 16, 128>}]} {
    %c0_i32 = arith.constant 0 : i32
    %0 = arith.cmpi eq, %arg2, %c0_i32 : i32
    %1 = arith.extui %0 : i1 to i32
    %c0_i32_0 = arith.constant 0 : i32
    %2 = arith.cmpi ne, %1, %c0_i32_0 : i32
    scf.if %2 {
      %cst_10 = arith.constant 0.000000e+00 : f32
      %12 = vector.broadcast %cst_10 : f32 to vector<16x128xf32>
      %c0_11 = arith.constant 0 : index
      %c0_12 = arith.constant 0 : index
      %13 = vector.load %arg7[%c0_11, %c0_12] : memref<16x128xf32, #tpu.memory_space<vmem>>, vector<16x128xf32>
      tpu.vector_store %arg7[%c0_11, %c0_12], %12 {strides = array<i32>} : memref<16x128xf32, #tpu.memory_space<vmem>>, vector<16x128xf32>,
    } else {
    }
    %c0 = arith.constant 0 : index
    %c0_1 = arith.constant 0 : index
    %3 = vector.load %arg7[%c0, %c0_1] : memref<16x128xf32, #tpu.memory_space<vmem>>, vector<16x128xf32>
    %c0_2 = arith.constant 0 : index
    %c0_3 = arith.constant 0 : index
    %4 = vector.load %arg3[%c0_2, %c0_3] : memref<16x128xbf16, #tpu.memory_space<vmem>>, vector<16x128xbf16>
    %c0_4 = arith.constant 0 : index
    %c0_5 = arith.constant 0 : index
    %5 = vector.load %arg4[%c0_4, %c0_5] : memref<128x128xbf16, #tpu.memory_space<vmem>>, vector<128x128xbf16>
    %cst = arith.constant dense<0.000000e+00> : vector<16x128xf32>
    %6 = tpu.matmul %4, %5, %cst {dimension_numbers = #tpu.dot_dimension_numbers<[1], [0], [0], [1], [0, 0, 1, 1], [], []>} : vector<16x128xbf16>, vector<128x128xbf16>, vector<16x128xf32> -> vector<16x128xf32>
    %7 = arith.addf %3, %6 : vector<16x128xf32>
    %c0_6 = arith.constant 0 : index
    %c0_7 = arith.constant 0 : index
    %8 = vector.load %arg7[%c0_6, %c0_7] : memref<16x128xf32, #tpu.memory_space<vmem>>, vector<16x128xf32>
    tpu.vector_store %arg7[%c0_6, %c0_7], %7 {strides = array<i32>} : memref<16x128xf32, #tpu.memory_space<vmem>>, vector<16x128xf32>,
    %c0_i32_8 = arith.constant 0 : i32
    %9 = arith.cmpi eq, %arg2, %c0_i32_8 : i32
    %10 = arith.extui %9 : i1 to i32
    %c0_i32_9 = arith.constant 0 : i32
    %11 = arith.cmpi ne, %10, %c0_i32_9 : i32
    scf.if %11 {
      %c0_10 = arith.constant 0 : index
      %c0_11 = arith.constant 0 : index
      %12 = vector.load %arg7[%c0_10, %c0_11] : memref<16x128xf32, #tpu.memory_space<vmem>>, vector<16x128xf32>
      %c0_12 = arith.constant 0 : index
      %c0_13 = arith.constant 0 : index
      %13 = vector.load %arg5[%c0_12, %c0_13] : memref<1x128xf32, #tpu.memory_space<vmem>>, vector<1x128xf32>
      %14 = vector.broadcast %13 : vector<1x128xf32> to vector<16x128xf32>
      %15 = arith.addf %12, %14 : vector<16x128xf32>
      %c0_14 = arith.constant 0 : index
      %c0_15 = arith.constant 0 : index
      %16 = vector.load %arg6[%c0_14, %c0_15] : memref<16x128xf32, #tpu.memory_space<vmem>>, vector<16x128xf32>
      tpu.vector_store %arg6[%c0_14, %c0_15], %15 {strides = array<i32>} : memref<16x128xf32, #tpu.memory_space<vmem>>, vector<16x128xf32>,
    } else {
    }
    return
  }
  func.func @transform_0(%arg0: i32, %arg1: i32, %arg2: i32) -> (i32, i32) {
    %c0_i32 = arith.constant 0 : i32
    return %arg0, %arg2 : i32, i32
  }
  func.func @transform_1(%arg0: i32, %arg1: i32, %arg2: i32) -> (i32, i32) {
    %c0_i32 = arith.constant 0 : i32
    return %arg2, %arg1 : i32, i32
  }
  func.func @transform_2(%arg0: i32, %arg1: i32, %arg2: i32) -> (i32, i32) {
    %c0_i32 = arith.constant 0 : i32
    %c0_i32_0 = arith.constant 0 : i32
    return %c0_i32, %arg1 : i32, i32
  }
  func.func @transform_3(%arg0: i32, %arg1: i32, %arg2: i32) -> (i32, i32) {
    %c0_i32 = arith.constant 0 : i32
    return %arg0, %arg1 : i32, i32
  }
}

</mosaic_0001>

<bundles_post_ra>
// kernel: feature_classifier_forward.1
= control target key start
LH: loop header
LB: loop body
LE: loop exit
PB: predicated region body
PF: predicated region fallthrough
CT: control target
= control target key end

     0   :  { %8 = vsyncpa [#allocation4], 0  ;;  %s250_s12 = smov [#allocation3]   ;;  %s290_s0 = inlined_call_operand.vmem [shape: bf16[16,128], index: 0, kind: input, shape index: {}]   ;;  %s291_s1 = inlined_call_operand.hbm [shape: bf16[128,128], index: 1, kind: input, shape index: {}]   ;;  %s292_s2 = inlined_call_operand.vmem [shape: f32[1,128], index: 2, kind: input, shape index: {}]   ;;  %s293_s3 = inlined_call_operand.vmem [shape: f32[16,128], index: 3, kind: output, shape index: {}]  }
   0x1   :  { %s16_s13 = sshll.u32 %s250_s12, 4  ;;  %s17_s13 = int_to_ptr.vmem [resolvable:$true] %s16_s13 }
   0x2   :  { %s236_s14 = scalar_lea.vmem %s17_s13, 1024  ;;  %p241_p1 = scmp.lt.s32.totalorder %s17_s13, %s17_s13 }
   0x3   :  { %p237_p0 = scmp.ne.s32.totalorder %s17_s13, %s236_s14  ;;  %p242_p2 = scmp.lt.s32.totalorder %s236_s14, %s236_s14 }
   0x5   :  { %p243_p3 = por %p242_p2, %p241_p1 }
   0x7   :  { %p244_p4 = pnand %p243_p3, %p237_p0 }
   0x9   :  { %247 = shalt.err (!%p244_p4)
}
   0xa   :  { %s251_s15 = smov 64   ;;  %s252_s16 = smov 4  }
   0xb   :  { %22 = dma.hbm_to_vmem [thread:$0]  %s291_s1, 1024, %s17_s13, [#allocation4], %s251_s15, %s251_s15, %s252_s16  }
   0xc   :  { %248 = dma.done.wait [#allocation4], 1024  }
   0xd   :  { %249 = vsyncadd [#allocation4], 4294966272  ;;  %v253_v0 = vmov 0.0   ;;  %vm254_vm0 = vmmov 0   ;;  %v219_v1 = vld [vmem:[#allocation3 + $0x38] sm:$0xff]   ;;  %v220_v2 = vld [vmem:[#allocation3 + $0x30] sm:$0xff]  }
   0xe   :  { %194 = vmatprep.subr.bf16.mxu0 %v253_v0  ;;  %210 = vmatprep.mubr.msk.bf16.mxu0 %vm254_vm0, %v253_v0  ;;  %v221_v3 = vld [vmem:[#allocation3 + $0x28] sm:$0xff]   ;;  %v222_v4 = vld [vmem:[#allocation3 + $0x20] sm:$0xff]   ;;  %v223_v5 = vld [vmem:[#allocation3 + $0x18] sm:$0xff]  }
   0xf   :  { %195 = vmatpush3.bf16.msra.mxu0 %v219_v1  ;;  %v224_v6 = vld [vmem:[#allocation3 + $0x10] sm:$0xff]   ;;  %v225_v7 = vld [vmem:[#allocation3 + $0x8] sm:$0xff]   ;;  %v226_v8 = vld [vmem:[#allocation3] sm:$0xff]  }
  0x10   :  { %196 = vmatprep.subr.bf16.mxu0 %v253_v0  ;;  %v227_v9 = vld [vmem:[%s290_s0] sm:$0xff]  }
  0x11   :  { %v184_v10 = vld [vmem:[%s292_s2] ss:$0 sm:$0xff] }
  0x13   :  { %197 = vmatpush3.bf16.msra.mxu0 %v220_v2 }
  0x14   :  { %198 = vmatprep.subr.bf16.mxu0 %v253_v0 }
  0x17   :  { %199 = vmatpush3.bf16.msra.mxu0 %v221_v3 }
  0x18   :  { %200 = vmatprep.subr.bf16.mxu0 %v253_v0 }
  0x1b   :  { %201 = vmatpush3.bf16.msra.mxu0 %v222_v4 }
  0x1c   :  { %202 = vmatprep.subr.bf16.mxu0 %v253_v0 }
  0x1f   :  { %203 = vmatpush3.bf16.msra.mxu0 %v223_v5 }
  0x20   :  { %204 = vmatprep.subr.bf16.mxu0 %v253_v0 }
  0x23   :  { %205 = vmatpush3.bf16.msra.mxu0 %v224_v6 }
  0x24   :  { %206 = vmatprep.subr.bf16.mxu0 %v253_v0 }
  0x27   :  { %207 = vmatpush3.bf16.msra.mxu0 %v225_v7 }
  0x28   :  { %208 = vmatprep.subr.bf16.mxu0 %v253_v0 }
  0x2b   :  { %209 = vmatpush3.bf16.msra.mxu0 %v226_v8 }
  0x2e   :  { %211 = vmatmul.mubr.bf16.vlgmr.msra.gmra.mxu0 %v227_v9 }
  0xee   :  { %v143_v11 = vpop.f32.mrf.mxu0 }
  0xef   :  { %v166_v12 = vadd.f32 %v184_v10, %v143_v11 }
  0xf0   :  { %v212_v13 = vpop.f32.mrf.mxu0 }
  0xf1   :  { %168 = vst [vmem:[%s293_s3] sm:$0xff] %v166_v12 }
  0xf2   :  { %v146_v14 = vpop.f32.mrf.mxu0 }
  0xf3   :  { %v167_v15 = vadd.f32 %v184_v10, %v146_v14 }
  0xf4   :  { %v213_v16 = vpop.f32.mrf.mxu0 }
  0xf5   :  { %169 = vst [vmem:[%s293_s3 + $0x8] sm:$0xff] %v167_v15 }
  0xf6   :  { %174 = vsyncpa [#allocation4], 1 }

</bundles_post_ra>
